<compile_context>
chip_gen: v7x
topology: tpu7x:2x2x1
jax: 0.10.0
libtpu: 0.0.40
codegen_flags: <defaults>
</compile_context>

<pallas_src>
import functools

import jax
import jax.numpy as jnp
from jax.experimental import pallas as pl
from jax.experimental.pallas import tpu as pltpu

EPS = 1e-5
HEAD_LANES = 128  # lane-dense output width for the fused mu|logvar head


def _round_up(x, m):
    return ((x + m - 1) // m) * m


def _encoder_kernel(x_ref, w_ref, aux_ref, whead_ref, out_ref, *, hidden_dim):
    """Fused 3x(Linear -> LayerNorm -> ReLU) + fused mu|logvar head, one batch tile."""
    H = hidden_dim
    inv_n = 1.0 / float(H)
    mm_dtype = w_ref.dtype            # bf16 on the v6e/v7x fast path, f32 otherwise
    head_pad = out_ref.shape[-1]

    def row(i, width):
        # (1, width) f32 parameter row; VPU broadcasts it over the batch tile.
        return aux_ref[i, :, :width]

    def lin_ln_relu(h, w, b, g, be):
        # Linear (MXU, f32 accumulation).
        y = jnp.dot(h.astype(mm_dtype), w, preferred_element_type=jnp.float32) + b
        # LayerNorm (eps=1e-5, biased variance, matches PyTorch).  Decoupled
        # sum / sum-of-squares reductions can overlap on the XLU; clamp the
        # variance against f32 cancellation so rsqrt never sees < 0.
        mean = jnp.sum(y, axis=-1, keepdims=True) * inv_n
        mean_sq = jnp.sum(y * y, axis=-1, keepdims=True) * inv_n
        var = jnp.maximum(mean_sq - mean * mean, 0.0)
        yn = (y - mean) * jax.lax.rsqrt(var + EPS)
        yn = yn * g + be
        # ReLU; Dropout is identity in eval mode.
        return jnp.maximum(yn, 0.0)

    h = x_ref[...].astype(jnp.float32)
    h = lin_ln_relu(h, w_ref[0], row(0, H), row(1, H), row(2, H))
    h = lin_ln_relu(h, w_ref[1], row(3, H), row(4, H), row(5, H))
    h = lin_ln_relu(h, w_ref[2], row(6, H), row(7, H), row(8, H))

    # Fused mu|logvar head: one MXU matmul, one lane-dense unmasked store.
    out_ref[...] = (
        jnp.dot(h.astype(mm_dtype), whead_ref[...],
                preferred_element_type=jnp.float32)
        + row(9, head_pad)
    ).astype(out_ref.dtype)


def pack_params(p, matmul_dtype=jnp.float32):
    """Pack PyTorch-style params into the kernel's 3 weight/aux operands."""
    input_dim, hidden = p["w1"].shape
    latent = p["wmu"].shape[1]
    head_pad = max(HEAD_LANES, _round_up(2 * latent, 128))
    aux_w = max(hidden, head_pad)

    if input_dim > hidden:
        # TODO(synk): input_dim > hidden_dim would need a separate (unstacked) w1 operand.
        raise NotImplementedError("pack_params assumes input_dim <= hidden_dim")

    # (3, H, H): w1 zero-padded on its input rows, stacked with w2/w3.
    w1p = jnp.zeros((hidden, hidden), jnp.float32).at[:input_dim, :].set(
        p["w1"].astype(jnp.float32))
    w = jnp.stack([w1p, p["w2"].astype(jnp.float32),
                   p["w3"].astype(jnp.float32)], axis=0).astype(matmul_dtype)

    # (10, 1, aux_w) f32: rows 0..8 = per-layer (bias, gamma, beta), row 9 = head bias.
    aux = jnp.zeros((10, 1, aux_w), jnp.float32)
    rows = [p["b1"], p["g1"], p["be1"],
            p["b2"], p["g2"], p["be2"],
            p["b3"], p["g3"], p["be3"]]
    for i, r in enumerate(rows):
        aux = aux.at[i, 0, :hidden].set(r.astype(jnp.float32))
    bhead = jnp.zeros((head_pad,), jnp.float32)
    bhead = bhead.at[:latent].set(p["bmu"]).at[latent:2 * latent].set(p["blv"])
    aux = aux.at[9, 0, :head_pad].set(bhead)

    # Lane-dense fused head: columns [0:L)=mu, [L:2L)=logvar, rest zero-padded
    # (sliced off in the wrapper, never normalized).
    whead = jnp.zeros((hidden, head_pad), jnp.float32)
    whead = whead.at[:, :latent].set(p["wmu"]).at[:, latent:2 * latent].set(p["wlv"])
    whead = whead.astype(matmul_dtype)

    return dict(w=w, aux=aux, whead=whead,
                hidden=hidden, input_dim=input_dim, latent=latent,
                head_pad=head_pad, aux_w=aux_w)


def encoder_forward(x, packed, *, batch_tile=256):
    """x: (B, input_dim) float32.  packed: output of pack_params.  Returns (mu, logvar)."""
    B, in_dim = x.shape
    H = packed["hidden"]
    L = packed["latent"]
    HP = packed["head_pad"]
    AW = packed["aux_w"]

    # Sublane-dense batch tile: 16 rows/packed-sublane-group for bf16 operands, 8 for f32.
    sub = 16 if packed["w"].dtype == jnp.bfloat16 else 8
    Bp = _round_up(B, sub)
    bt = _round_up(min(batch_tile, Bp), sub)
    Bp = _round_up(Bp, bt)
    n_bt = Bp // bt

    # Zero-pad x: batch rows to Bp, feature lanes to H (matches zero-padded w1 rows).
    xp = jnp.zeros((Bp, H), jnp.float32).at[:B, :in_dim].set(x.astype(jnp.float32))

    out = pl.pallas_call(
        functools.partial(_encoder_kernel, hidden_dim=H),
        out_shape=jax.ShapeDtypeStruct((Bp, HP), jnp.float32),
        grid=(n_bt,),
        in_specs=[
            pl.BlockSpec((bt, H), lambda i: (i, 0)),           # x: streamed per batch tile
            pl.BlockSpec((3, H, H), lambda i: (0, 0, 0)),      # weights: grid-invariant (VMEM-resident)
            pl.BlockSpec((10, 1, AW), lambda i: (0, 0, 0)),    # bias/gamma/beta/head-bias rows
            pl.BlockSpec((H, HP), lambda i: (0, 0)),           # fused head weight
        ],
        out_specs=pl.BlockSpec((bt, HP), lambda i: (i, 0)),
        compiler_params=pltpu.CompilerParams(
            dimension_semantics=("parallel",)),                # shard batch tiles across TCs (v7x)
    )(xp, packed["w"], packed["aux"], packed["whead"])

    mu = out[:B, :L]
    logvar = out[:B, L:2 * L]
    return mu, logvar


def init_params(key, input_dim, hidden_dim, latent_dim):
    """Deterministic synthetic parameters, PyTorch-style.
    Linear weights stored as (in_features, out_features)."""
    ks = jax.random.split(key, 5)

    def linear(k, fan_in, fan_out):
        bound = 1.0 / jnp.sqrt(jnp.float32(fan_in))
        kw, kb = jax.random.split(k)
        w = jax.random.uniform(kw, (fan_in, fan_out), jnp.float32, -bound, bound)
        b = jax.random.uniform(kb, (fan_out,), jnp.float32, -bound, bound)
        return w, b

    w1, b1 = linear(ks[0], input_dim, hidden_dim)
    w2, b2 = linear(ks[1], hidden_dim, hidden_dim)
    w3, b3 = linear(ks[2], hidden_dim, hidden_dim)
    wmu, bmu = linear(ks[3], hidden_dim, latent_dim)
    wlv, blv = linear(ks[4], hidden_dim, latent_dim)

    ones = jnp.ones((hidden_dim,), jnp.float32)
    zeros = jnp.zeros((hidden_dim,), jnp.float32)

    return dict(
        w1=w1, b1=b1, g1=ones, be1=zeros,
        w2=w2, b2=b2, g2=ones, be2=zeros,
        w3=w3, b3=b3, g3=ones, be3=zeros,
        wmu=wmu, bmu=bmu,
        wlv=wlv, blv=blv,
    )


def encoder_ref(x, p):
    """Pure-JAX reference of the eval-mode forward for verification."""
    def block(h, w, b, g, be):
        y = h @ w + b
        mean = jnp.mean(y, axis=-1, keepdims=True)
        var = jnp.mean((y - mean) ** 2, axis=-1, keepdims=True)
        y = (y - mean) / jnp.sqrt(var + EPS) * g + be
        return jnp.maximum(y, 0.0)

    h = block(x, p["w1"], p["b1"], p["g1"], p["be1"])
    h = block(h, p["w2"], p["b2"], p["g2"], p["be2"])
    h = block(h, p["w3"], p["b3"], p["g3"], p["be3"])
    return h @ p["wmu"] + p["bmu"], h @ p["wlv"] + p["blv"]


if __name__ == "__main__":
    B, INPUT_DIM, HIDDEN_DIM, LATENT_DIM = 8, 16, 32, 8

    key = jax.random.PRNGKey(0)
    kx, kp, kx2 = jax.random.split(key, 3)
    x = jax.random.normal(kx, (B, INPUT_DIM), jnp.float32)
    params = init_params(kp, INPUT_DIM, HIDDEN_DIM, LATENT_DIM)
    mu_ref, lv_ref = encoder_ref(x, params)

    # ---- f32 matmul path (reference-exact), single batch tile ----
    packed32 = pack_params(params, matmul_dtype=jnp.float32)
    mu, logvar = encoder_forward(x, packed32)
    jax.block_until_ready((mu, logvar))
    assert mu.shape == (B, LATENT_DIM) and logvar.shape == (B, LATENT_DIM)
    assert jnp.allclose(mu, mu_ref, atol=1e-4, rtol=1e-4)
    assert jnp.allclose(logvar, lv_ref, atol=1e-4, rtol=1e-4)

    # ---- larger batch: exercises the batch grid (grid > 1, padded batch) ----
    B2 = 272
    x2 = jax.random.normal(kx2, (B2, INPUT_DIM), jnp.float32)
    mu2, lv2 = encoder_forward(x2, packed32, batch_tile=256)
    jax.block_until_ready((mu2, lv2))
    mu2_ref, lv2_ref = encoder_ref(x2, params)
    assert mu2.shape == (B2, LATENT_DIM) and lv2.shape == (B2, LATENT_DIM)
    assert jnp.allclose(mu2, mu2_ref, atol=1e-4, rtol=1e-4)
    assert jnp.allclose(lv2, lv2_ref, atol=1e-4, rtol=1e-4)

    # ---- bf16 matmul fast path (v6e/v7x): bf16 MXU operands, f32 accum + f32 LN ----
    packed16 = pack_params(params, matmul_dtype=jnp.bfloat16)
    mu16, lv16 = encoder_forward(x, packed16)
    jax.block_until_ready((mu16, lv16))
    assert jnp.allclose(mu16, mu_ref, atol=1e-1, rtol=1e-1)
    assert jnp.allclose(lv16, lv_ref, atol=1e-1, rtol=1e-1)

    print("KERNEL_OK")
</pallas_src>

<mosaic_0001>
module attributes {stable_mosaic.version = 11 : i64} {
  func.func @_encoder_kernel(%arg0: i32, %arg1: memref<8x32xf32, #tpu.memory_space<vmem>>, %arg2: memref<3x32x32xf32, #tpu.memory_space<vmem>>, %arg3: memref<10x1x128xf32, #tpu.memory_space<vmem>>, %arg4: memref<32x128xf32, #tpu.memory_space<vmem>>, %arg5: memref<8x128xf32, #tpu.memory_space<vmem>>) attributes {dimension_semantics = [#tpu.dimension_semantics<parallel>], iteration_bounds = array<i64: 1>, scalar_prefetch = 0 : i64, scratch_operands = 0 : i64, tpu.core_type = #tpu.core_type<tc>, window_params = [{transform_indices = @transform_0, window_bounds = array<i64: 8, 32>}, {pipeline_mode = #tpu.pipeline_mode<synchronous>, transform_indices = @transform_1, window_bounds = array<i64: 3, 32, 32>}, {pipeline_mode = #tpu.pipeline_mode<synchronous>, transform_indices = @transform_2, window_bounds = array<i64: 10, 1, 128>}, {pipeline_mode = #tpu.pipeline_mode<synchronous>, transform_indices = @transform_3, window_bounds = array<i64: 32, 128>}, {transform_indices = @transform_4, window_bounds = array<i64: 8, 128>}]} {
    %c0 = arith.constant 0 : index
    %c0_0 = arith.constant 0 : index
    %0 = vector.load %arg1[%c0, %c0_0] : memref<8x32xf32, #tpu.memory_space<vmem>>, vector<8x32xf32>
    %c0_1 = arith.constant 0 : index
    %c0_2 = arith.constant 0 : index
    %c0_3 = arith.constant 0 : index
    %1 = vector.load %arg2[%c0_1, %c0_2, %c0_3] : memref<3x32x32xf32, #tpu.memory_space<vmem>>, vector<1x32x32xf32>
    %2 = vector.shape_cast %1 : vector<1x32x32xf32> to vector<32x32xf32>
    %c0_4 = arith.constant 0 : index
    %c0_5 = arith.constant 0 : index
    %c0_6 = arith.constant 0 : index
    %3 = vector.load %arg3[%c0_4, %c0_5, %c0_6] : memref<10x1x128xf32, #tpu.memory_space<vmem>>, vector<1x1x32xf32>
    %4 = vector.shape_cast %3 : vector<1x1x32xf32> to vector<1x32xf32>
    %c1 = arith.constant 1 : index
    %c0_7 = arith.constant 0 : index
    %c0_8 = arith.constant 0 : index
    %5 = vector.load %arg3[%c1, %c0_7, %c0_8] : memref<10x1x128xf32, #tpu.memory_space<vmem>>, vector<1x1x32xf32>
    %6 = vector.shape_cast %5 : vector<1x1x32xf32> to vector<1x32xf32>
    %c2 = arith.constant 2 : index
    %c0_9 = arith.constant 0 : index
    %c0_10 = arith.constant 0 : index
    %7 = vector.load %arg3[%c2, %c0_9, %c0_10] : memref<10x1x128xf32, #tpu.memory_space<vmem>>, vector<1x1x32xf32>
    %8 = vector.shape_cast %7 : vector<1x1x32xf32> to vector<1x32xf32>
    %cst = arith.constant dense<0.000000e+00> : vector<8x32xf32>
    %9 = tpu.matmul %0, %2, %cst {dimension_numbers = #tpu.dot_dimension_numbers<[1], [0], [0], [1], [0, 0, 1, 1], [], []>} : vector<8x32xf32>, vector<32x32xf32>, vector<8x32xf32> -> vector<8x32xf32>
    %10 = vector.broadcast %4 : vector<1x32xf32> to vector<8x32xf32>
    %11 = arith.addf %9, %10 : vector<8x32xf32>
    %cst_11 = arith.constant dense<0.000000e+00> : vector<8xf32>
    %12 = vector.multi_reduction <add>, %11, %cst_11 [1] : vector<8x32xf32> to vector<8xf32>
    %13 = vector.shape_cast %12 : vector<8xf32> to vector<8x1xf32>
    %cst_12 = arith.constant 3.125000e-02 : f32
    %14 = vector.broadcast %cst_12 : f32 to vector<8x1xf32>
    %15 = arith.mulf %13, %14 : vector<8x1xf32>
    %16 = arith.mulf %11, %11 : vector<8x32xf32>
    %cst_13 = arith.constant dense<0.000000e+00> : vector<8xf32>
    %17 = vector.multi_reduction <add>, %16, %cst_13 [1] : vector<8x32xf32> to vector<8xf32>
    %18 = vector.shape_cast %17 : vector<8xf32> to vector<8x1xf32>
    %cst_14 = arith.constant 3.125000e-02 : f32
    %19 = vector.broadcast %cst_14 : f32 to vector<8x1xf32>
    %20 = arith.mulf %18, %19 : vector<8x1xf32>
    %21 = arith.mulf %15, %15 : vector<8x1xf32>
    %22 = arith.subf %20, %21 : vector<8x1xf32>
    %cst_15 = arith.constant 0.000000e+00 : f32
    %23 = vector.broadcast %cst_15 : f32 to vector<8x1xf32>
    %24 = arith.maximumf %22, %23 : vector<8x1xf32>
    %25 = vector.broadcast %15 : vector<8x1xf32> to vector<8x32xf32>
    %26 = arith.subf %11, %25 : vector<8x32xf32>
    %cst_16 = arith.constant 9.99999974E-6 : f32
    %27 = vector.broadcast %cst_16 : f32 to vector<8x1xf32>
    %28 = arith.addf %24, %27 : vector<8x1xf32>
    %29 = math.rsqrt %28 : vector<8x1xf32>
    %30 = vector.broadcast %29 : vector<8x1xf32> to vector<8x32xf32>
    %31 = arith.mulf %26, %30 : vector<8x32xf32>
    %32 = vector.broadcast %6 : vector<1x32xf32> to vector<8x32xf32>
    %33 = arith.mulf %31, %32 : vector<8x32xf32>
    %34 = vector.broadcast %8 : vector<1x32xf32> to vector<8x32xf32>
    %35 = arith.addf %33, %34 : vector<8x32xf32>
    %cst_17 = arith.constant 0.000000e+00 : f32
    %36 = vector.broadcast %cst_17 : f32 to vector<8x32xf32>
    %37 = arith.maximumf %35, %36 : vector<8x32xf32>
    %c1_18 = arith.constant 1 : index
    %c0_19 = arith.constant 0 : index
    %c0_20 = arith.constant 0 : index
    %38 = vector.load %arg2[%c1_18, %c0_19, %c0_20] : memref<3x32x32xf32, #tpu.memory_space<vmem>>, vector<1x32x32xf32>
    %39 = vector.shape_cast %38 : vector<1x32x32xf32> to vector<32x32xf32>
    %c3 = arith.constant 3 : index
    %c0_21 = arith.constant 0 : index
    %c0_22 = arith.constant 0 : index
    %40 = vector.load %arg3[%c3, %c0_21, %c0_22] : memref<10x1x128xf32, #tpu.memory_space<vmem>>, vector<1x1x32xf32>
    %41 = vector.shape_cast %40 : vector<1x1x32xf32> to vector<1x32xf32>
    %c4 = arith.constant 4 : index
    %c0_23 = arith.constant 0 : index
    %c0_24 = arith.constant 0 : index
    %42 = vector.load %arg3[%c4, %c0_23, %c0_24] : memref<10x1x128xf32, #tpu.memory_space<vmem>>, vector<1x1x32xf32>
    %43 = vector.shape_cast %42 : vector<1x1x32xf32> to vector<1x32xf32>
    %c5 = arith.constant 5 : index
    %c0_25 = arith.constant 0 : index
    %c0_26 = arith.constant 0 : index
    %44 = vector.load %arg3[%c5, %c0_25, %c0_26] : memref<10x1x128xf32, #tpu.memory_space<vmem>>, vector<1x1x32xf32>
    %45 = vector.shape_cast %44 : vector<1x1x32xf32> to vector<1x32xf32>
    %cst_27 = arith.constant dense<0.000000e+00> : vector<8x32xf32>
    %46 = tpu.matmul %37, %39, %cst_27 {dimension_numbers = #tpu.dot_dimension_numbers<[1], [0], [0], [1], [0, 0, 1, 1], [], []>} : vector<8x32xf32>, vector<32x32xf32>, vector<8x32xf32> -> vector<8x32xf32>
    %47 = vector.broadcast %41 : vector<1x32xf32> to vector<8x32xf32>
    %48 = arith.addf %46, %47 : vector<8x32xf32>
    %cst_28 = arith.constant dense<0.000000e+00> : vector<8xf32>
    %49 = vector.multi_reduction <add>, %48, %cst_28 [1] : vector<8x32xf32> to vector<8xf32>
    %50 = vector.shape_cast %49 : vector<8xf32> to vector<8x1xf32>
    %cst_29 = arith.constant 3.125000e-02 : f32
    %51 = vector.broadcast %cst_29 : f32 to vector<8x1xf32>
    %52 = arith.mulf %50, %51 : vector<8x1xf32>
    %53 = arith.mulf %48, %48 : vector<8x32xf32>
    %cst_30 = arith.constant dense<0.000000e+00> : vector<8xf32>
    %54 = vector.multi_reduction <add>, %53, %cst_30 [1] : vector<8x32xf32> to vector<8xf32>
    %55 = vector.shape_cast %54 : vector<8xf32> to vector<8x1xf32>
    %cst_31 = arith.constant 3.125000e-02 : f32
    %56 = vector.broadcast %cst_31 : f32 to vector<8x1xf32>
    %57 = arith.mulf %55, %56 : vector<8x1xf32>
    %58 = arith.mulf %52, %52 : vector<8x1xf32>
    %59 = arith.subf %57, %58 : vector<8x1xf32>
    %cst_32 = arith.constant 0.000000e+00 : f32
    %60 = vector.broadcast %cst_32 : f32 to vector<8x1xf32>
    %61 = arith.maximumf %59, %60 : vector<8x1xf32>
    %62 = vector.broadcast %52 : vector<8x1xf32> to vector<8x32xf32>
    %63 = arith.subf %48, %62 : vector<8x32xf32>
    %cst_33 = arith.constant 9.99999974E-6 : f32
    %64 = vector.broadcast %cst_33 : f32 to vector<8x1xf32>
    %65 = arith.addf %61, %64 : vector<8x1xf32>
    %66 = math.rsqrt %65 : vector<8x1xf32>
    %67 = vector.broadcast %66 : vector<8x1xf32> to vector<8x32xf32>
    %68 = arith.mulf %63, %67 : vector<8x32xf32>
    %69 = vector.broadcast %43 : vector<1x32xf32> to vector<8x32xf32>
    %70 = arith.mulf %68, %69 : vector<8x32xf32>
    %71 = vector.broadcast %45 : vector<1x32xf32> to vector<8x32xf32>
    %72 = arith.addf %70, %71 : vector<8x32xf32>
    %cst_34 = arith.constant 0.000000e+00 : f32
    %73 = vector.broadcast %cst_34 : f32 to vector<8x32xf32>
    %74 = arith.maximumf %72, %73 : vector<8x32xf32>
    %c2_35 = arith.constant 2 : index
    %c0_36 = arith.constant 0 : index
    %c0_37 = arith.constant 0 : index
    %75 = vector.load %arg2[%c2_35, %c0_36, %c0_37] : memref<3x32x32xf32, #tpu.memory_space<vmem>>, vector<1x32x32xf32>
    %76 = vector.shape_cast %75 : vector<1x32x32xf32> to vector<32x32xf32>
    %c6 = arith.constant 6 : index
    %c0_38 = arith.constant 0 : index
    %c0_39 = arith.constant 0 : index
    %77 = vector.load %arg3[%c6, %c0_38, %c0_39] : memref<10x1x128xf32, #tpu.memory_space<vmem>>, vector<1x1x32xf32>
    %78 = vector.shape_cast %77 : vector<1x1x32xf32> to vector<1x32xf32>
    %c7 = arith.constant 7 : index
    %c0_40 = arith.constant 0 : index
    %c0_41 = arith.constant 0 : index
    %79 = vector.load %arg3[%c7, %c0_40, %c0_41] : memref<10x1x128xf32, #tpu.memory_space<vmem>>, vector<1x1x32xf32>
    %80 = vector.shape_cast %79 : vector<1x1x32xf32> to vector<1x32xf32>
    %c8 = arith.constant 8 : index
    %c0_42 = arith.constant 0 : index
    %c0_43 = arith.constant 0 : index
    %81 = vector.load %arg3[%c8, %c0_42, %c0_43] : memref<10x1x128xf32, #tpu.memory_space<vmem>>, vector<1x1x32xf32>
    %82 = vector.shape_cast %81 : vector<1x1x32xf32> to vector<1x32xf32>
    %cst_44 = arith.constant dense<0.000000e+00> : vector<8x32xf32>
    %83 = tpu.matmul %74, %76, %cst_44 {dimension_numbers = #tpu.dot_dimension_numbers<[1], [0], [0], [1], [0, 0, 1, 1], [], []>} : vector<8x32xf32>, vector<32x32xf32>, vector<8x32xf32> -> vector<8x32xf32>
    %84 = vector.broadcast %78 : vector<1x32xf32> to vector<8x32xf32>
    %85 = arith.addf %83, %84 : vector<8x32xf32>
    %cst_45 = arith.constant dense<0.000000e+00> : vector<8xf32>
    %86 = vector.multi_reduction <add>, %85, %cst_45 [1] : vector<8x32xf32> to vector<8xf32>
    %87 = vector.shape_cast %86 : vector<8xf32> to vector<8x1xf32>
    %cst_46 = arith.constant 3.125000e-02 : f32
    %88 = vector.broadcast %cst_46 : f32 to vector<8x1xf32>
    %89 = arith.mulf %87, %88 : vector<8x1xf32>
    %90 = arith.mulf %85, %85 : vector<8x32xf32>
    %cst_47 = arith.constant dense<0.000000e+00> : vector<8xf32>
    %91 = vector.multi_reduction <add>, %90, %cst_47 [1] : vector<8x32xf32> to vector<8xf32>
    %92 = vector.shape_cast %91 : vector<8xf32> to vector<8x1xf32>
    %cst_48 = arith.constant 3.125000e-02 : f32
    %93 = vector.broadcast %cst_48 : f32 to vector<8x1xf32>
    %94 = arith.mulf %92, %93 : vector<8x1xf32>
    %95 = arith.mulf %89, %89 : vector<8x1xf32>
    %96 = arith.subf %94, %95 : vector<8x1xf32>
    %cst_49 = arith.constant 0.000000e+00 : f32
    %97 = vector.broadcast %cst_49 : f32 to vector<8x1xf32>
    %98 = arith.maximumf %96, %97 : vector<8x1xf32>
    %99 = vector.broadcast %89 : vector<8x1xf32> to vector<8x32xf32>
    %100 = arith.subf %85, %99 : vector<8x32xf32>
    %cst_50 = arith.constant 9.99999974E-6 : f32
    %101 = vector.broadcast %cst_50 : f32 to vector<8x1xf32>
    %102 = arith.addf %98, %101 : vector<8x1xf32>
    %103 = math.rsqrt %102 : vector<8x1xf32>
    %104 = vector.broadcast %103 : vector<8x1xf32> to vector<8x32xf32>
    %105 = arith.mulf %100, %104 : vector<8x32xf32>
    %106 = vector.broadcast %80 : vector<1x32xf32> to vector<8x32xf32>
    %107 = arith.mulf %105, %106 : vector<8x32xf32>
    %108 = vector.broadcast %82 : vector<1x32xf32> to vector<8x32xf32>
    %109 = arith.addf %107, %108 : vector<8x32xf32>
    %cst_51 = arith.constant 0.000000e+00 : f32
    %110 = vector.broadcast %cst_51 : f32 to vector<8x32xf32>
    %111 = arith.maximumf %109, %110 : vector<8x32xf32>
    %c0_52 = arith.constant 0 : index
    %c0_53 = arith.constant 0 : index
    %112 = vector.load %arg4[%c0_52, %c0_53] : memref<32x128xf32, #tpu.memory_space<vmem>>, vector<32x128xf32>
    %cst_54 = arith.constant dense<0.000000e+00> : vector<8x128xf32>
    %113 = tpu.matmul %111, %112, %cst_54 {dimension_numbers = #tpu.dot_dimension_numbers<[1], [0], [0], [1], [0, 0, 1, 1], [], []>} : vector<8x32xf32>, vector<32x128xf32>, vector<8x128xf32> -> vector<8x128xf32>
    %c9 = arith.constant 9 : index
    %c0_55 = arith.constant 0 : index
    %c0_56 = arith.constant 0 : index
    %114 = vector.load %arg3[%c9, %c0_55, %c0_56] : memref<10x1x128xf32, #tpu.memory_space<vmem>>, vector<1x1x128xf32>
    %115 = vector.shape_cast %114 : vector<1x1x128xf32> to vector<1x128xf32>
    %116 = vector.broadcast %115 : vector<1x128xf32> to vector<8x128xf32>
    %117 = arith.addf %113, %116 : vector<8x128xf32>
    %c0_57 = arith.constant 0 : index
    %c0_58 = arith.constant 0 : index
    %118 = vector.load %arg5[%c0_57, %c0_58] : memref<8x128xf32, #tpu.memory_space<vmem>>, vector<8x128xf32>
    tpu.vector_store %arg5[%c0_57, %c0_58], %117 {strides = array<i32>} : memref<8x128xf32, #tpu.memory_space<vmem>>, vector<8x128xf32>,
    return
  }
  func.func @transform_0(%arg0: i32) -> (i32, i32) {
    %c0_i32 = arith.constant 0 : i32
    %c0_i32_0 = arith.constant 0 : i32
    return %arg0, %c0_i32 : i32, i32
  }
  func.func @transform_1(%arg0: i32) -> (i32, i32, i32) {
    %c0_i32 = arith.constant 0 : i32
    %c0_i32_0 = arith.constant 0 : i32
    %c0_i32_1 = arith.constant 0 : i32
    %c0_i32_2 = arith.constant 0 : i32
    return %c0_i32, %c0_i32_0, %c0_i32_1 : i32, i32, i32
  }
  func.func @transform_2(%arg0: i32) -> (i32, i32, i32) {
    %c0_i32 = arith.constant 0 : i32
    %c0_i32_0 = arith.constant 0 : i32
    %c0_i32_1 = arith.constant 0 : i32
    %c0_i32_2 = arith.constant 0 : i32
    return %c0_i32, %c0_i32_0, %c0_i32_1 : i32, i32, i32
  }
  func.func @transform_3(%arg0: i32) -> (i32, i32) {
    %c0_i32 = arith.constant 0 : i32
    %c0_i32_0 = arith.constant 0 : i32
    %c0_i32_1 = arith.constant 0 : i32
    return %c0_i32, %c0_i32_0 : i32, i32
  }
  func.func @transform_4(%arg0: i32) -> (i32, i32) {
    %c0_i32 = arith.constant 0 : i32
    %c0_i32_0 = arith.constant 0 : i32
    return %arg0, %c0_i32 : i32, i32
  }
}

</mosaic_0001>

<bundles_post_ra>
// kernel: tpu_custom_call.1
= control target key start
LH: loop header
LB: loop body
LE: loop exit
PB: predicated region body
PF: predicated region fallthrough
CT: control target
= control target key end

     0   :  { %9 = vsyncpa [#allocation3], 0  ;;  %s900_s0 = inlined_call_operand.hbm [shape: f32[8,32], index: 0, kind: input, shape index: {}]   ;;  %s901_s1 = inlined_call_operand.hbm [shape: f32[3,32,32], index: 1, kind: input, shape index: {}]   ;;  %s902_s2 = inlined_call_operand.hbm [shape: f32[10,1,128], index: 2, kind: input, shape index: {}]   ;;  %s903_s3 = inlined_call_operand.hbm [shape: f32[32,128], index: 3, kind: input, shape index: {}]   ;;  %s904_s4 = inlined_call_operand.hbm [shape: f32[8,128], index: 4, kind: output, shape index: {}]  }
   0x1   :  { %10 = vsyncpa [#allocation6], 0 }
   0x2   :  { %11 = vsyncpa [#allocation9], 0 }
   0x3   :  { %12 = vsyncpa [#allocation4], 0  ;;  %s775_s15 = smov [#allocation5]   ;;  %s657_s19 = scalar_lea.hbm %s901_s1, 1536 }
   0x4   :  { %s28_s16 = sshll.u32 %s775_s15, 4  ;;  %p658_p0 = scmp.ne.s32.totalorder %s901_s1, %s657_s19  ;;  %s29_s16 = int_to_ptr.vmem [resolvable:$true] %s28_s16 }
   0x5   :  { %p661_p1 = scmp.lt.u32.totalorder %s657_s19, %s901_s1 }
   0x7   :  { %p663_p2 = pnand %p661_p1, %p658_p0 }
   0x9   :  { %666 = shalt.err (!%p663_p2)
}
   0xa   :  { %s667_s24 = scalar_lea.vmem %s29_s16, 1536  ;;  %p672_p4 = scmp.lt.s32.totalorder %s29_s16, %s29_s16 }
   0xb   :  { %p668_p3 = scmp.ne.s32.totalorder %s29_s16, %s667_s24  ;;  %p673_p5 = scmp.lt.s32.totalorder %s667_s24, %s667_s24 }
   0xd   :  { %p674_p6 = por %p673_p5, %p672_p4 }
   0xf   :  { %p675_p7 = pnand %p674_p6, %p668_p3 }
  0x11   :  { %678 = shalt.err (!%p675_p7)
}
  0x12   :  { %s776_s25 = smov 128   ;;  %s777_s26 = smov 8  }
  0x13   :  { %34 = dma.hbm_to_vmem [thread:$0]  %s901_s1, 1536, %s29_s16, [#allocation6], %s776_s25, %s776_s25, %s777_s26  }
  0x14   :  { %s778_s29 = smov [#allocation2]   ;;  %s779_s5 = smov [#allocation7]  }
  0x15   :  { %s19_s30 = sshll.u32 %s778_s29, 4  ;;  %s40_s6 = sshll.u32 %s779_s5, 4  ;;  %s20_s30 = int_to_ptr.vmem [resolvable:$true] %s19_s30  ;;  %s41_s6 = int_to_ptr.vmem [resolvable:$true] %s40_s6 }
  0x16   :  { %s679_s9 = scalar_lea.hbm %s900_s0, 128 }
  0x17   :  { %p680_p8 = scmp.ne.s32.totalorder %s900_s0, %s679_s9  ;;  %p683_p9 = scmp.lt.u32.totalorder %s679_s9, %s900_s0 }
  0x19   :  { %p685_p10 = pnand %p683_p9, %p680_p8 }
  0x1b   :  { %688 = shalt.err (!%p685_p10)
}
  0x1c   :  { %s689_s1 = scalar_lea.vmem %s20_s30, 128  ;;  %p694_p12 = scmp.lt.s32.totalorder %s20_s30, %s20_s30 }
  0x1d   :  { %p690_p11 = scmp.ne.s32.totalorder %s20_s30, %s689_s1  ;;  %p695_p13 = scmp.lt.s32.totalorder %s689_s1, %s689_s1 }
  0x1f   :  { %p696_p0 = por %p695_p13, %p694_p12 }
  0x21   :  { %p697_p1 = pnand %p696_p0, %p690_p11 }
  0x23   :  { %700 = shalt.err (!%p697_p1)
}
  0x24   :  { %22 = dma.hbm_to_vmem [thread:$0]  %s900_s0, 128, %s20_s30, [#allocation3]  }
  0x25   :  { %s701_s18 = scalar_lea.hbm %s902_s2, 160 }
  0x26   :  { %p702_p2 = scmp.ne.s32.totalorder %s902_s2, %s701_s18  ;;  %p705_p3 = scmp.lt.u32.totalorder %s701_s18, %s902_s2 }
  0x28   :  { %p707_p4 = pnand %p705_p3, %p702_p2 }
  0x2a   :  { %710 = shalt.err (!%p707_p4)
}
  0x2b   :  { %s711_s23 = scalar_lea.vmem %s41_s6, 160  ;;  %p716_p6 = scmp.lt.s32.totalorder %s41_s6, %s41_s6 }
  0x2c   :  { %p712_p5 = scmp.ne.s32.totalorder %s41_s6, %s711_s23  ;;  %p717_p7 = scmp.lt.s32.totalorder %s711_s23, %s711_s23 }
  0x2e   :  { %p718_p8 = por %p717_p7, %p716_p6 }
  0x30   :  { %p719_p9 = pnand %p718_p8, %p712_p5 }
  0x32   :  { %722 = shalt.err (!%p719_p9)
}
  0x33   :  { %s780_s0 = smov 16   ;;  %s781_s24 = smov 1  }
  0x34   :  { %46 = dma.hbm_to_vmem [thread:$0]  %s902_s2, 160, %s41_s6, [#allocation6], %s780_s0, %s780_s0, %s781_s24  }
  0x35   :  { %s782_s29 = smov [#allocation8]   ;;  %s723_s8 = scalar_lea.hbm %s903_s3, 512 }
  0x36   :  { %s52_s30 = sshll.u32 %s782_s29, 4  ;;  %p724_p10 = scmp.ne.s32.totalorder %s903_s3, %s723_s8  ;;  %s53_s30 = int_to_ptr.vmem [resolvable:$true] %s52_s30 }
  0x37   :  { %p727_p11 = scmp.lt.u32.totalorder %s723_s8, %s903_s3 }
  0x39   :  { %p729_p12 = pnand %p727_p11, %p724_p10 }
  0x3b   :  { %732 = shalt.err (!%p729_p12)
}
  0x3c   :  { %s733_s13 = scalar_lea.vmem %s53_s30, 512  ;;  %p738_p0 = scmp.lt.s32.totalorder %s53_s30, %s53_s30 }
  0x3d   :  { %p734_p13 = scmp.ne.s32.totalorder %s53_s30, %s733_s13  ;;  %p739_p1 = scmp.lt.s32.totalorder %s733_s13, %s733_s13 }
  0x3f   :  { %p740_p2 = por %p739_p1, %p738_p0 }
  0x41   :  { %p741_p3 = pnand %p740_p2, %p734_p13 }
  0x43   :  { %744 = shalt.err (!%p741_p3)
}
  0x44   :  { %58 = dma.hbm_to_vmem [thread:$0]  %s903_s3, 512, %s53_s30, [#allocation9], %s776_s25, %s776_s25, %s777_s26  }
  0x45   :  { %767 = dma.done.wait [#allocation3], 128  }
  0x46   :  { %768 = vsyncadd [#allocation3], 4294967168 }
  0x47   :  { %769 = dma.done.wait [#allocation6], 1696  }
  0x48   :  { %770 = vsyncadd [#allocation6], 4294965600 }
  0x49   :  { %771 = dma.done.wait [#allocation9], 512  }
  0x4a   :  { %772 = vsyncadd [#allocation9], 4294966784  ;;  %v783_v0 = vmov 0.0|0.0   ;;  %vm784_vm0 = vmmov 0   ;;  %v785_v1 = vmov 0.0   ;;  %v72_v2 = vld [vmem:[#allocation5] sm:$0xff] }
  0x4b   :  { %615 = vmatprep.subr.bf16.mxu0 %v783_v0  ;;  %579 = vmatprep.mubr.msk.f32.mxu0 %vm784_vm0, %v785_v1  ;;  %v73_v3 = vld [vmem:[#allocation5 + $0x8] sm:$0xff]  ;;  %v74_v4 = vld [vmem:[#allocation5 + $0x10] sm:$0xff]  ;;  %v75_v6 = vld [vmem:[#allocation5 + $0x18] sm:$0xff]  ;;  %vm87_vm1 = vcmask 261120   ;;  %s786_s3 = smov [#allocation10]  }
  0x4c   :  { %621 = vmatprep.subr.bf16.mxu1 %v783_v0  ;;  %590 = vmatprep.mubr.msk.f32.mxu1 %vm784_vm0, %v785_v1  ;;  %v616_v5 = vpack.c.bf16 %v73_v3, %v72_v2  ;;  %v619_v7 = vpack.c.bf16 %v75_v6, %v74_v4  ;;  %v71_v8 = vld [vmem:[#allocation2] sm:$0xff]  ;;  %v537_v9 = vld [vmem:[#allocation7] ss:$0 sm:$0xff]  ;;  %v194_v17 = vld [vmem:[#allocation5 + $0x28] sm:$0xff]  ;;  %s526_s25 = sshll.u32 %s786_s3, 4  ;;  %s527_s25 = int_to_ptr.vmem [resolvable:$true] %s526_s25 }
  0x4d   :  { %v193_v16 = vld [vmem:[#allocation5 + $0x20] sm:$0xff]  ;;  %v195_v18 = vld [vmem:[#allocation5 + $0x30] sm:$0xff]  ;;  %v196_v20 = vld [vmem:[#allocation5 + $0x38] sm:$0xff]  ;;  %s745_s26 = scalar_lea.vmem %s527_s25, 128  ;;  %p750_p5 = scmp.lt.s32.totalorder %s527_s25, %s527_s25 }
  0x4e   :  { %617 = vmatpush3.bf16.msra.mxu0 %v616_v5  ;;  %v622_v19 = vpack.c.bf16 %v194_v17, %v193_v16  ;;  %v625_v21 = vpack.c.bf16 %v196_v20, %v195_v18  ;;  %v539_v32 = vld [vmem:[#allocation7 + $0x1] ss:$0 sm:$0xff]  ;;  %v540_v34 = vld [vmem:[#allocation7 + $0x2] ss:$0 sm:$0xff]  ;;  %v541_v38 = vld [vmem:[#allocation7 + $0x3] ss:$0 sm:$0xff]  ;;  %p746_p4 = scmp.ne.s32.totalorder %s527_s25, %s745_s26  ;;  %p751_p6 = scmp.lt.s32.totalorder %s745_s26, %s745_s26 }
  0x4f   :  { %618 = vmatprep.subr.bf16.mxu0 %v783_v0  ;;  %v314_v45 = vld [vmem:[#allocation5 + $0x40] sm:$0xff]  ;;  %v315_v46 = vld [vmem:[#allocation5 + $0x48] sm:$0xff]  ;;  %v316_v48 = vld [vmem:[#allocation5 + $0x50] sm:$0xff] }
  0x50   :  { %623 = vmatpush3.bf16.msra.mxu1 %v622_v19  ;;  %v628_v47 = vpack.c.bf16 %v315_v46, %v314_v45  ;;  %v317_v49 = vld [vmem:[#allocation5 + $0x58] sm:$0xff]  ;;  %v543_v61 = vld [vmem:[#allocation7 + $0x4] ss:$0 sm:$0xff]  ;;  %v544_v63 = vld [vmem:[#allocation7 + $0x5] ss:$0 sm:$0xff]  ;;  %p752_p7 = por %p751_p6, %p750_p5 }
  0x51   :  { %624 = vmatprep.subr.bf16.mxu1 %v783_v0  ;;  %v631_v50 = vpack.c.bf16 %v317_v49, %v316_v48  ;;  %v545_v4 = vld [vmem:[#allocation7 + $0x6] ss:$0 sm:$0xff] }
  0x52   :  { %620 = vmatpush3.bf16.msra.mxu0 %v619_v7  ;;  %p753_p8 = pnand %p752_p7, %p746_p4 }
  0x53   :  { %627 = vmatprep.subr.bf16.mxu0 %v783_v0 }
  0x54   :  { %626 = vmatpush3.bf16.msra.mxu1 %v625_v21 }
  0x55   :  { %580 = vmatmul.mubr.msk.f32.vlgmr.msra.gmra.mrb[0].mxu0 %vm87_vm1, %v71_v8  ;;  %633 = vmatprep.subr.bf16.mxu1 %v783_v0 }
  0x56   :  { %601 = vmatprep.mubr.msk.f32.mxu0 %vm784_vm0, %v785_v1  ;;  %629 = vmatpush3.bf16.msra.mxu0 %v628_v47 }
  0x57   :  { %630 = vmatprep.subr.bf16.mxu0 %v783_v0 }
  0x5a   :  { %632 = vmatpush3.bf16.msra.mxu0 %v631_v50 }
 0x128   :  { %v157_v10 = vpop.f32.mrb[0].mxu0 }
 0x129   :  { %v158_v11 = vadd.f32 %v537_v9, %v157_v10  ;;  %v581_v12 = vpop.f32.mrb[1].mxu0 }
 0x12a   :  { %v435_v12 = vld [vmem:[#allocation8 + $0x8] sm:$0xff] }
 0x12b   :  { %v161_v13 = vsel %vm87_vm1, %v158_v11, 0.0  ;;  %v165_v14 = vmul.f32 %v158_v11, %v158_v11 }
 0x12c   :  { %162 = vadd.xlane.f32.xlu0 %v161_v13 }
 0x12d   :  { %v166_v15 = vsel %vm87_vm1, %v165_v14, 0.0  ;;  %v436_v14 = vld [vmem:[#allocation8 + $0x10] sm:$0xff] }
 0x130   :  { %167 = vadd.xlane.f32.xlu0 %v166_v15  ;;  %v437_v15 = vld [vmem:[#allocation8 + $0x18] sm:$0xff] }
 0x131   :  { %v637_v16 = vpack.c.bf16 %v437_v15, %v436_v14 }
 0x1b9   :  { %v163_v22 = vpop.xlane.xlu0 %162 }
 0x1ba   :  { %v164_v23 = vmul.f32 0.03125, %v163_v22 }
 0x1bc   :  { %v170_v25 = vmul.f32 %v164_v23, %v164_v23  ;;  %v173_v30 = vsub.f32 %v158_v11, %v164_v23  ;;  %v434_v11 = vld [vmem:[#allocation8] sm:$0xff] }
 0x1bd   :  { %v168_v24 = vpop.xlane.xlu0 %167  ;;  %v634_v13 = vpack.c.bf16 %v435_v12, %v434_v11 }
 0x1be   :  { %v169_v26 = vmul.f32 0.03125, %v168_v24 }
 0x1c0   :  { %v171_v27 = vsub.f32 %v169_v26, %v170_v25 }
 0x1c2   :  { %v172_v28 = vmax.f32 %v171_v27, 0.0  ;;  %v547_v27 = vld [vmem:[#allocation7 + $0x7] ss:$0 sm:$0xff] }
 0x1c4   :  { %v174_v29 = vadd.f32 1e-05, %v172_v28 }
 0x1c6   :  { %651 = vrsqrt.f32 %v174_v29  ;;  %v548_v29 = vld [vmem:[#allocation7 + $0x8] ss:$0 sm:$0xff] }
 0x1d0   :  { %v652_v31 = vpop.eup %651 }
 0x1d1   :  { %v176_v33 = vmul.f32 %v652_v31, %v173_v30 }
 0x1d3   :  { %v183_v35 = vmul.f32 %v539_v32, %v176_v33 }
 0x1d5   :  { %v190_v36 = vadd.f32 %v540_v34, %v183_v35 }
 0x1d7   :  { %v191_v37 = vmax.f32 %v190_v36, 0.0 }
 0x1d9   :  { %591 = vmatmul.mubr.msk.f32.vlgmr.msra.gmra.mrb[0].mxu1 %vm87_vm1, %v191_v37 }
 0x1da   :  { %612 = vmatprep.mubr.msk.f32.mxu1 %vm784_vm0, %v785_v1  ;;  %635 = vmatpush3.bf16.msra.mxu1 %v634_v13 }
 0x1db   :  { %636 = vmatprep.subr.bf16.mxu1 %v783_v0  ;;  %v549_v0 = vld [vmem:[#allocation7 + $0x9] ss:$0 sm:$0xff] }
 0x1de   :  { %638 = vmatpush3.bf16.msra.mxu1 %v637_v16 }
 0x2ac   :  { %v278_v39 = vpop.f32.mrb[0].mxu1 }
 0x2ad   :  { %v279_v40 = vadd.f32 %v541_v38, %v278_v39  ;;  %v592_v41 = vpop.f32.mrb[1].mxu1 }
 0x2af   :  { %v282_v42 = vsel %vm87_vm1, %v279_v40, 0.0  ;;  %v286_v43 = vmul.f32 %v279_v40, %v279_v40 }
 0x2b0   :  { %283 = vadd.xlane.f32.xlu1 %v282_v42 }
 0x2b1   :  { %v287_v44 = vsel %vm87_vm1, %v286_v43, 0.0 }
 0x2b4   :  { %288 = vadd.xlane.f32.xlu1 %v287_v44 }
 0x33d   :  { %v284_v51 = vpop.xlane.xlu1 %283 }
 0x33e   :  { %v285_v52 = vmul.f32 0.03125, %v284_v51 }
 0x340   :  { %v291_v54 = vmul.f32 %v285_v52, %v285_v52  ;;  %v294_v59 = vsub.f32 %v279_v40, %v285_v52 }
 0x341   :  { %v289_v53 = vpop.xlane.xlu1 %288 }
 0x342   :  { %v290_v55 = vmul.f32 0.03125, %v289_v53 }
 0x344   :  { %v292_v56 = vsub.f32 %v290_v55, %v291_v54 }
 0x346   :  { %v293_v57 = vmax.f32 %v292_v56, 0.0 }
 0x348   :  { %v295_v58 = vadd.f32 1e-05, %v293_v57 }
 0x34a   :  { %653 = vrsqrt.f32 %v295_v58 }
 0x354   :  { %v654_v60 = vpop.eup %653 }
 0x355   :  { %v297_v62 = vmul.f32 %v654_v60, %v294_v59 }
 0x357   :  { %v304_v1 = vmul.f32 %v543_v61, %v297_v62 }
 0x359   :  { %v311_v2 = vadd.f32 %v544_v63, %v304_v1 }
 0x35b   :  { %v312_v3 = vmax.f32 %v311_v2, 0.0 }
 0x35d   :  { %602 = vmatmul.mubr.msk.f32.vlgmr.msra.gmra.mrb[2].mxu0 %vm87_vm1, %v312_v3 }
 0x430   :  { %v399_v5 = vpop.f32.mrb[2].mxu0 }
 0x431   :  { %v400_v6 = vadd.f32 %v545_v4, %v399_v5  ;;  %v603_v7 = vpop.f32.mrb[3].mxu0 }
 0x433   :  { %v403_v8 = vsel %vm87_vm1, %v400_v6, 0.0  ;;  %v407_v9 = vmul.f32 %v400_v6, %v400_v6 }
 0x434   :  { %404 = vadd.xlane.f32.xlu0 %v403_v8 }
 0x435   :  { %v408_v10 = vsel %vm87_vm1, %v407_v9, 0.0 }
 0x436   :  { %409 = vadd.xlane.f32.xlu1 %v408_v10 }
 0x4c1   :  { %v405_v17 = vpop.xlane.xlu0 %404 }
 0x4c2   :  { %v406_v18 = vmul.f32 0.03125, %v405_v17 }
 0x4c3   :  { %v410_v19 = vpop.xlane.xlu1 %409 }
 0x4c4   :  { %v412_v20 = vmul.f32 %v406_v18, %v406_v18  ;;  %v411_v21 = vmul.f32 0.03125, %v410_v19  ;;  %v415_v25 = vsub.f32 %v400_v6, %v406_v18 }
 0x4c6   :  { %v413_v22 = vsub.f32 %v411_v21, %v412_v20 }
 0x4c8   :  { %v414_v23 = vmax.f32 %v413_v22, 0.0 }
 0x4ca   :  { %v416_v24 = vadd.f32 1e-05, %v414_v23 }
 0x4cc   :  { %655 = vrsqrt.f32 %v416_v24 }
 0x4d6   :  { %v656_v26 = vpop.eup %655 }
 0x4d7   :  { %v418_v28 = vmul.f32 %v656_v26, %v415_v25 }
 0x4d9   :  { %v425_v30 = vmul.f32 %v547_v27, %v418_v28 }
 0x4db   :  { %v432_v31 = vadd.f32 %v548_v29, %v425_v30 }
 0x4dd   :  { %v433_v32 = vmax.f32 %v432_v31, 0.0 }
 0x4df   :  { %613 = vmatmul.mubr.msk.f32.vlgmr.msra.gmra.mrb[2].mxu1 %vm87_vm1, %v433_v32 }
 0x5b2   :  { %v515_v33 = vpop.f32.mrb[2].mxu1 }
 0x5b3   :  { %v516_v34 = vadd.f32 %v549_v0, %v515_v33  ;;  %v614_v35 = vpop.f32.mrb[3].mxu1 }
 0x5b5   :  { %519 = vst [vmem:[#allocation10] sm:$0xff] %v516_v34 }
 0x5b6   :  { %756 = shalt.err (!%p753_p8)
}
 0x5b7   :  { %s757_s15 = scalar_lea.hbm %s904_s4, 128 }
 0x5b8   :  { %p758_p9 = scmp.ne.s32.totalorder %s904_s4, %s757_s15  ;;  %p761_p10 = scmp.lt.u32.totalorder %s757_s15, %s904_s4 }
 0x5ba   :  { %p763_p11 = pnand %p761_p10, %p758_p9 }
 0x5bc   :  { %766 = shalt.err (!%p763_p11)
}
 0x5bd   :  { %529 = dma.vmem_to_hbm [thread:$0]  %s527_s25, 128, %s904_s4, [#allocation4]  }
 0x5be   :  { %773 = dma.done.wait [#allocation4], 128  }
 0x5bf   :  { %774 = vsyncadd [#allocation4], 4294967168 }
 0x5c0   :  { %533 = vsyncpa [#allocation3], 1 }
 0x5c1   :  { %534 = vsyncpa [#allocation6], 1 }
 0x5c2   :  { %535 = vsyncpa [#allocation9], 1 }
 0x5c3   :  { %536 = vsyncpa [#allocation4], 1 }

</bundles_post_ra>
